<compile_context>
chip_gen: v6e
topology: v6e:2x2x1
jax: 0.10.0
libtpu: 0.0.40
codegen_flags: <defaults>
</compile_context>

<pallas_src>
import functools
import math

import jax
import jax.numpy as jnp
from jax.experimental import pallas as pl
from jax.experimental.pallas import tpu as pltpu

_MASK_VALUE = -1e30            # finite sentinel: avoids inf-inf NaN in tiled softmax


@functools.lru_cache(maxsize=1)
def _vmem_limit():
    """Generation-dependent scoped-VMEM budget (don't hard-code 32 MiB)."""
    try:
        cap = pltpu.get_tpu_info().vmem_capacity_bytes
    except Exception:
        return 32 * 1024 * 1024                       # conservative fallback
    # ~60% of physical VMEM, clamped to [32 MiB, 96 MiB]:
    #   v5e/v6e (128 MiB) -> ~76 MiB ; v7x (64 MiB) -> ~38 MiB.
    return int(min(96 * 1024 * 1024, max(32 * 1024 * 1024, cap * 0.6)))


def _pick_div(dim, candidates):
    """Largest candidate that evenly divides `dim`; fall back to full dim."""
    for c in candidates:
        if dim % c == 0:
            return c
    return dim


def _attn_tile(T):
    """q/kv tile for the flash kernel (T is padded up to a multiple of this)."""
    for c in (256, 128, 64, 32, 16, 8):
        if T >= c:
            return c
    return 8


# ---------------------------------------------------------------------------
# Linear: (tm, K) @ (K, tn) + (1, tn), f32 accumulation.
# Grid (N//tn, M//tm): the weight/bias block index only changes on the *outer*
# axis, so each weight tile is DMA'd once and reused across all M tiles.
# ---------------------------------------------------------------------------
def _linear_kernel(x_ref, w_ref, b_ref, o_ref):
    acc = jnp.dot(x_ref[...], w_ref[...], preferred_element_type=jnp.float32)
    o_ref[...] = (acc + b_ref[...]).astype(o_ref.dtype)


def _linear(x2d, w, b2d, out_dtype):
    M, K = x2d.shape
    N = w.shape[1]
    tm = _pick_div(M, (1024, 512, 256, 128, 64, 32, 16, 8))
    tn = _pick_div(N, (512, 256, 128))
    # NOTE(review): weight/bias could additionally be single-buffered
    # (pipeline_mode=pl.Buffered(1)); N-tiling already caps the resident
    # weight to a few MiB so double-buffering it is cheap.
    return pl.pallas_call(
        _linear_kernel,
        out_shape=jax.ShapeDtypeStruct((M, N), out_dtype),
        grid_spec=pltpu.PrefetchScalarGridSpec(
            num_scalar_prefetch=0,
            grid=(N // tn, M // tm),                      # j outer, i inner
            in_specs=[
                pl.BlockSpec((tm, K), lambda j, i: (i, 0)),
                pl.BlockSpec((K, tn), lambda j, i: (0, j)),   # reused across i
                pl.BlockSpec((1, tn), lambda j, i: (0, j)),
            ],
            out_specs=pl.BlockSpec((tm, tn), lambda j, i: (i, j)),
        ),
        compiler_params=pltpu.CompilerParams(
            dimension_semantics=("parallel", "parallel"),
            vmem_limit_bytes=_vmem_limit()),
    )(x2d, w, b2d)


# ---------------------------------------------------------------------------
# c_proj with the head merge fused in: grid (B, T//tm, H), accumulate over H.
# Avoids the (B,H,T,hd) -> (B,T,C) transpose HBM round trip.
# ---------------------------------------------------------------------------
def _proj_kernel(y_ref, w_ref, b_ref, o_ref, acc_ref):
    h = pl.program_id(2)

    @pl.when(h == 0)
    def _init():
        acc_ref[...] = jnp.zeros(acc_ref.shape, acc_ref.dtype)

    acc_ref[...] += jnp.dot(y_ref[0, 0], w_ref[...],
                            preferred_element_type=jnp.float32)

    @pl.when(h == pl.num_programs(2) - 1)
    def _finalize():
        o_ref[0] = (acc_ref[...] + b_ref[...]).astype(o_ref.dtype)


def _proj_fused(y, w, b2d, out_dtype):
    """y: (B, H, Tp, hd); w: (H*hd, C) head-major rows; b2d: (1, C)."""
    B, H, Tp, hd = y.shape
    C = w.shape[1]
    tm = _pick_div(Tp, (512, 256, 128, 64, 32, 16, 8))
    return pl.pallas_call(
        _proj_kernel,
        out_shape=jax.ShapeDtypeStruct((B, Tp, C), out_dtype),
        grid_spec=pltpu.PrefetchScalarGridSpec(
            num_scalar_prefetch=0,
            grid=(B, Tp // tm, H),
            in_specs=[
                pl.BlockSpec((1, 1, tm, hd), lambda b, t, h: (b, h, t, 0)),
                pl.BlockSpec((hd, C), lambda b, t, h: (h, 0)),
                pl.BlockSpec((1, C), lambda b, t, h: (0, 0)),
            ],
            out_specs=pl.BlockSpec((1, tm, C), lambda b, t, h: (b, t, 0)),
            scratch_shapes=[pltpu.VMEM((tm, C), jnp.float32)],
        ),
        compiler_params=pltpu.CompilerParams(
            dimension_semantics=("parallel", "parallel", "arbitrary"),
            vmem_limit_bytes=_vmem_limit()),
    )(y, w, b2d)


# ---------------------------------------------------------------------------
# Flash attention over a lower-triangular grid.
# Grid = (B, H, n_tri_steps); qi/ki per step come from scalar-prefetched
# tables, so fully-masked upper-triangular tiles are never visited.
# ---------------------------------------------------------------------------
def _flash_kernel(qi_tab, ki_tab, q_ref, k_ref, v_ref, o_ref,
                  m_ref, l_ref, acc_ref, *, sm_scale, tq, tk, approx_recip):
    t = pl.program_id(2)
    qi = qi_tab[t]
    ki = ki_tab[t]
    ki_last = ((qi + 1) * tq - 1) // tk          # last valid kv tile for this q tile

    @pl.when(ki == 0)
    def _init():
        m_ref[...] = jnp.full(m_ref.shape, _MASK_VALUE, m_ref.dtype)
        l_ref[...] = jnp.zeros(l_ref.shape, l_ref.dtype)
        acc_ref[...] = jnp.zeros(acc_ref.shape, acc_ref.dtype)

    # sm_scale folded into the (tq, hd) q block: ~tk/hd x less VPU work than
    # scaling the (tq, tk) score tile on every kv step.
    q = (q_ref[0, 0].astype(jnp.float32) * sm_scale).astype(q_ref.dtype)
    k = k_ref[0, 0]
    v = v_ref[0, 0]

    # q @ k^T on the MXU, f32 accumulation.
    s = jax.lax.dot_general(q, k, (((1,), (1,)), ((), ())),
                            preferred_element_type=jnp.float32)     # (tq, tk)

    # Causal mask only where this tile straddles the diagonal; off-diagonal
    # tiles (the majority) skip the iota/compare/select VPU passes entirely.
    needs_mask = (ki * tk + tk - 1) > (qi * tq)

    def _mask(sv):
        q_pos = qi * tq + jax.lax.broadcasted_iota(jnp.int32, (tq, tk), 0)
        k_pos = ki * tk + jax.lax.broadcasted_iota(jnp.int32, (tq, tk), 1)
        return jnp.where(q_pos >= k_pos, sv, _MASK_VALUE)

    s = jax.lax.cond(needs_mask, _mask, lambda sv: sv, s)

    # Online softmax (f32 scratch); p is cast to the compute dtype right after
    # the exp so the p@v operand (and any spill traffic) is half-width.
    m_prev = m_ref[...]
    m_new = jnp.maximum(m_prev, jnp.max(s, axis=-1, keepdims=True))
    alpha = jnp.exp(m_prev - m_new)
    p = jnp.exp(s - m_new)
    l_ref[...] = alpha * l_ref[...] + jnp.sum(p, axis=-1, keepdims=True)
    acc_ref[...] = alpha * acc_ref[...] + jnp.dot(
        p.astype(v.dtype), v, preferred_element_type=jnp.float32)
    m_ref[...] = m_new

    @pl.when(ki == ki_last)
    def _finalize():
        if approx_recip:
            inv_l = pl.reciprocal(l_ref[...], approx=True)   # EUP, ~free slot
        else:
            inv_l = 1.0 / l_ref[...]                         # exact for f32 path
        o_ref[0, 0] = (acc_ref[...] * inv_l).astype(o_ref.dtype)


def _flash_attention(q, k, v, sm_scale, out_dtype, *, tq, tk, approx_recip):
    B, H, Tp, hd = q.shape
    nq = Tp // tq

    # Lower-triangular visit order (qi ascending, ki = 0..ki_last(qi)).
    qi_list, ki_list = [], []
    for qi in range(nq):
        ki_last = ((qi + 1) * tq - 1) // tk
        for ki in range(ki_last + 1):
            qi_list.append(qi)
            ki_list.append(ki)
    qi_tab = jnp.asarray(qi_list, dtype=jnp.int32)
    ki_tab = jnp.asarray(ki_list, dtype=jnp.int32)
    steps = len(qi_list)

    kernel = functools.partial(_flash_kernel, sm_scale=sm_scale, tq=tq, tk=tk,
                               approx_recip=approx_recip)
    return pl.pallas_call(
        kernel,
        out_shape=jax.ShapeDtypeStruct((B, H, Tp, hd), out_dtype),
        grid_spec=pltpu.PrefetchScalarGridSpec(
            num_scalar_prefetch=2,
            grid=(B, H, steps),
            in_specs=[
                pl.BlockSpec((1, 1, tq, hd),
                             lambda b, h, t, qt, kt: (b, h, qt[t], 0)),
                pl.BlockSpec((1, 1, tk, hd),
                             lambda b, h, t, qt, kt: (b, h, kt[t], 0)),
                pl.BlockSpec((1, 1, tk, hd),
                             lambda b, h, t, qt, kt: (b, h, kt[t], 0)),
            ],
            out_specs=pl.BlockSpec((1, 1, tq, hd),
                                   lambda b, h, t, qt, kt: (b, h, qt[t], 0)),
            scratch_shapes=[
                pltpu.VMEM((tq, 1), jnp.float32),    # running max m
                pltpu.VMEM((tq, 1), jnp.float32),    # running sum l
                pltpu.VMEM((tq, hd), jnp.float32),   # f32 output accumulator
            ],
        ),
        compiler_params=pltpu.CompilerParams(
            dimension_semantics=("parallel", "parallel", "arbitrary"),
            vmem_limit_bytes=_vmem_limit()),
    )(qi_tab, ki_tab, q, k, v)


# ---------------------------------------------------------------------------
# Full forward pass (matches PyTorch CausalSelfAttention.forward, eval mode).
# ---------------------------------------------------------------------------
def causal_self_attention(x, w_attn, b_attn, w_proj, b_proj, *, n_head,
                          compute_dtype=jnp.bfloat16):
    """x: (B, T, C); w_attn: (3C, C); b_attn: (3C,); w_proj: (C, C); b_proj: (C,)."""
    B, T, C = x.shape
    assert C % n_head == 0
    hd = C // n_head
    cd = compute_dtype

    # Pad T up to a multiple of the attention tile (keeps the tiled fast path
    # for any T; causal mask hides padded keys, padded rows are sliced off).
    t_attn = _attn_tile(T)
    Tp = ((T + t_attn - 1) // t_attn) * t_attn
    xp = x if Tp == T else jnp.pad(x, ((0, 0), (0, Tp - T), (0, 0)))

    # nn.Linear computes x @ W.T + b; transpose once here.  MXU operands in
    # compute_dtype (bf16 on v6e/v7x), biases & accumulation in f32.
    xc = jnp.asarray(xp).astype(cd)
    wqkv = jnp.asarray(w_attn).T.astype(cd)                     # (C, 3C)
    wproj = jnp.asarray(w_proj).T.astype(cd)                    # (C, C), head-major rows
    bqkv = jnp.asarray(b_attn).astype(jnp.float32)[None, :]     # (1, 3C)
    bproj = jnp.asarray(b_proj).astype(jnp.float32)[None, :]    # (1, C)

    # --- c_attn (N-tiled weight; never fully resident) ---
    qkv = _linear(xc.reshape(B * Tp, C), wqkv, bqkv, cd)        # (B*Tp, 3C)

    # Head split in XLA (cheap), attention blocks stay lane-dense on hd.
    qkv = qkv.reshape(B, Tp, 3, n_head, hd)
    q = qkv[:, :, 0].transpose(0, 2, 1, 3)                      # (B, H, Tp, hd)
    k = qkv[:, :, 1].transpose(0, 2, 1, 3)
    v = qkv[:, :, 2].transpose(0, 2, 1, 3)

    # --- causal flash attention (triangular grid) ---
    y = _flash_attention(q, k, v, 1.0 / math.sqrt(hd), cd,
                         tq=t_attn, tk=t_attn,
                         approx_recip=(cd != jnp.float32))      # (B, H, Tp, hd)

    # --- c_proj with fused head merge (no transpose HBM round trip) ---
    if hd % 8 == 0:
        out = _proj_fused(y, wproj, bproj, x.dtype)             # (B, Tp, C)
    else:
        # Fallback for head dims not divisible by the 8-sublane tiling.
        y2 = y.transpose(0, 2, 1, 3).reshape(B * Tp, C)
        out = _linear(y2.astype(cd), wproj, bproj, x.dtype).reshape(B, Tp, C)

    # TODO(synk): attn_dropout / resid_dropout not implemented (eval-mode identity).
    return out[:, :T, :]


# ---------------------------------------------------------------------------
# Pure-JAX reference
# ---------------------------------------------------------------------------
def _reference(x, w_attn, b_attn, w_proj, b_proj, n_head):
    B, T, C = x.shape
    hd = C // n_head
    qkv = x @ w_attn.T + b_attn
    q, k, v = qkv[..., :C], qkv[..., C:2 * C], qkv[..., 2 * C:]
    q = q.reshape(B, T, n_head, hd).transpose(0, 2, 1, 3)
    k = k.reshape(B, T, n_head, hd).transpose(0, 2, 1, 3)
    v = v.reshape(B, T, n_head, hd).transpose(0, 2, 1, 3)
    att = jnp.einsum('bhtd,bhsd->bhts', q, k) / math.sqrt(hd)
    mask = jnp.tril(jnp.ones((T, T), bool))
    att = jnp.where(mask[None, None], att, -jnp.inf)
    att = jax.nn.softmax(att, axis=-1)
    y = jnp.einsum('bhts,bhsd->bhtd', att, v)
    y = y.transpose(0, 2, 1, 3).reshape(B, T, C)
    return y @ w_proj.T + b_proj


if __name__ == "__main__":
    # Config 1: n_embd=32, n_head=4, block_size=8 (matches small module config).
    # Config 2: exercises T padding (48 -> 64), multi-tile triangular grid and
    #           the N-tiled linear path.
    configs = [
        (2, 8, 32, 4),     # (B, T, C, n_head), hd = 8
        (2, 48, 128, 2),   # hd = 64
    ]

    key = jax.random.PRNGKey(0)
    for B, T, C, n_head in configs:
        key, kx, k1, k2, k3, k4 = jax.random.split(key, 6)
        x = jax.random.normal(kx, (B, T, C), dtype=jnp.float32)
        bound = 1.0 / math.sqrt(C)
        w_attn = jax.random.uniform(k1, (3 * C, C), jnp.float32, -bound, bound)
        b_attn = jax.random.uniform(k2, (3 * C,), jnp.float32, -bound, bound)
        w_proj = jax.random.uniform(k3, (C, C), jnp.float32, -bound, bound)
        b_proj = jax.random.uniform(k4, (C,), jnp.float32, -bound, bound)

        y_ref = _reference(x, w_attn, b_attn, w_proj, b_proj, n_head)

        # f32-operand path (exact reciprocal).
        y32 = causal_self_attention(x, w_attn, b_attn, w_proj, b_proj,
                                    n_head=n_head, compute_dtype=jnp.float32)
        y32 = jax.block_until_ready(y32)
        assert y32.shape == (B, T, C)
        assert jnp.allclose(y32, y_ref, atol=2e-2, rtol=2e-2), \
            f"f32 path mismatch at config {(B, T, C, n_head)}"

        # bf16 MXU-operand path (production perf path on v6e/v7x).
        ybf = causal_self_attention(x, w_attn, b_attn, w_proj, b_proj,
                                    n_head=n_head, compute_dtype=jnp.bfloat16)
        ybf = jax.block_until_ready(ybf)
        assert ybf.shape == (B, T, C)
        assert float(jnp.max(jnp.abs(ybf.astype(jnp.float32) - y_ref))) < 0.2, \
            f"bf16 path mismatch at config {(B, T, C, n_head)}"

    print("KERNEL_OK")
</pallas_src>

<mosaic_0001>
module attributes {stable_mosaic.version = 11 : i64} {
  func.func @_linear_kernel(%arg0: i32, %arg1: i32, %arg2: memref<16x32xf32, #tpu.memory_space<vmem>>, %arg3: memref<32x96xf32, #tpu.memory_space<vmem>>, %arg4: memref<1x96xf32, #tpu.memory_space<vmem>>, %arg5: memref<16x96xf32, #tpu.memory_space<vmem>>) attributes {dimension_semantics = [#tpu.dimension_semantics<parallel>, #tpu.dimension_semantics<parallel>], iteration_bounds = array<i64: 1, 1>, scalar_prefetch = 0 : i64, scratch_operands = 0 : i64, tpu.core_type = #tpu.core_type<tc>, window_params = [{transform_indices = @transform_0, window_bounds = array<i64: 16, 32>}, {transform_indices = @transform_1, window_bounds = array<i64: 32, 96>}, {transform_indices = @transform_2, window_bounds = array<i64: 1, 96>}, {transform_indices = @transform_3, window_bounds = array<i64: 16, 96>}]} {
    %c0 = arith.constant 0 : index
    %c0_0 = arith.constant 0 : index
    %0 = vector.load %arg2[%c0, %c0_0] : memref<16x32xf32, #tpu.memory_space<vmem>>, vector<16x32xf32>
    %c0_1 = arith.constant 0 : index
    %c0_2 = arith.constant 0 : index
    %1 = vector.load %arg3[%c0_1, %c0_2] : memref<32x96xf32, #tpu.memory_space<vmem>>, vector<32x96xf32>
    %cst = arith.constant dense<0.000000e+00> : vector<16x96xf32>
    %2 = tpu.matmul %0, %1, %cst {dimension_numbers = #tpu.dot_dimension_numbers<[1], [0], [0], [1], [0, 0, 1, 1], [], []>} : vector<16x32xf32>, vector<32x96xf32>, vector<16x96xf32> -> vector<16x96xf32>
    %c0_3 = arith.constant 0 : index
    %c0_4 = arith.constant 0 : index
    %3 = vector.load %arg4[%c0_3, %c0_4] : memref<1x96xf32, #tpu.memory_space<vmem>>, vector<1x96xf32>
    %4 = vector.broadcast %3 : vector<1x96xf32> to vector<16x96xf32>
    %5 = arith.addf %2, %4 : vector<16x96xf32>
    %c0_5 = arith.constant 0 : index
    %c0_6 = arith.constant 0 : index
    %6 = vector.load %arg5[%c0_5, %c0_6] : memref<16x96xf32, #tpu.memory_space<vmem>>, vector<16x96xf32>
    tpu.vector_store %arg5[%c0_5, %c0_6], %5 {strides = array<i32>} : memref<16x96xf32, #tpu.memory_space<vmem>>, vector<16x96xf32>,
    return
  }
  func.func @transform_0(%arg0: i32, %arg1: i32) -> (i32, i32) {
    %c0_i32 = arith.constant 0 : i32
    %c0_i32_0 = arith.constant 0 : i32
    return %arg1, %c0_i32 : i32, i32
  }
  func.func @transform_1(%arg0: i32, %arg1: i32) -> (i32, i32) {
    %c0_i32 = arith.constant 0 : i32
    %c0_i32_0 = arith.constant 0 : i32
    return %c0_i32, %arg0 : i32, i32
  }
  func.func @transform_2(%arg0: i32, %arg1: i32) -> (i32, i32) {
    %c0_i32 = arith.constant 0 : i32
    %c0_i32_0 = arith.constant 0 : i32
    return %c0_i32, %arg0 : i32, i32
  }
  func.func @transform_3(%arg0: i32, %arg1: i32) -> (i32, i32) {
    %c0_i32 = arith.constant 0 : i32
    return %arg1, %arg0 : i32, i32
  }
}

</mosaic_0001>

<bundles_post_ra>
// kernel: tpu_custom_call.1
= control target key start
LH: loop header
LB: loop body
LE: loop exit
PB: predicated region body
PF: predicated region fallthrough
CT: control target
= control target key end

     0   :  { %8 = vsyncpa [#allocation3], 0  ;;  %s298_s0 = inlined_call_operand.hbm [shape: f32[16,32], index: 0, kind: input, shape index: {}]   ;;  %s299_s1 = inlined_call_operand.hbm [shape: f32[32,96], index: 1, kind: input, shape index: {}]   ;;  %s300_s2 = inlined_call_operand.vmem [shape: f32[1,96], index: 2, kind: input, shape index: {}]   ;;  %s301_s3 = inlined_call_operand.hbm [shape: f32[16,96], index: 3, kind: output, shape index: {}]  }
   0x1   :  { %9 = vsyncpa [#allocation6], 0 }
   0x2   :  { %10 = vsyncpa [#allocation4], 0  ;;  %s250_s12 = smov [#allocation2]  }
   0x3   :  { %s16_s13 = sshll.u32 %s250_s12, 4  ;;  %s17_s13 = int_to_ptr.vmem [resolvable:$true] %s16_s13 }
   0x4   :  { %s192_s14 = scalar_lea.vmem %s17_s13, 256  ;;  %p197_p1 = scmp.lt.s32.totalorder %s17_s13, %s17_s13 }
   0x5   :  { %p193_p0 = scmp.ne.s32.totalorder %s17_s13, %s192_s14  ;;  %p198_p2 = scmp.lt.s32.totalorder %s192_s14, %s192_s14 }
   0x7   :  { %p199_p3 = por %p198_p2, %p197_p1 }
   0x9   :  { %p200_p4 = pnand %p199_p3, %p193_p0 }
   0xb   :  { %203 = shalt.err (!%p200_p4)
}
   0xc   :  { %s251_s15 = smov 128   ;;  %s252_s16 = smov 8  }
   0xd   :  { %22 = dma.hbm_to_vmem [thread:$0]  %s298_s0, 256, %s17_s13, [#allocation3], %s251_s15, %s251_s15, %s252_s16  }
   0xe   :  { %s253_s19 = smov [#allocation5]  }
   0xf   :  { %s28_s20 = sshll.u32 %s253_s19, 4  ;;  %s29_s20 = int_to_ptr.vmem [resolvable:$true] %s28_s20 }
  0x10   :  { %s212_s21 = scalar_lea.vmem %s29_s20, 512  ;;  %p217_p6 = scmp.lt.s32.totalorder %s29_s20, %s29_s20 }
  0x11   :  { %p213_p5 = scmp.ne.s32.totalorder %s29_s20, %s212_s21  ;;  %p218_p7 = scmp.lt.s32.totalorder %s212_s21, %s212_s21 }
  0x13   :  { %p219_p8 = por %p218_p7, %p217_p6 }
  0x15   :  { %p220_p9 = pnand %p219_p8, %p213_p5 }
  0x17   :  { %223 = shalt.err (!%p220_p9)
}
  0x18   :  { %34 = dma.hbm_to_vmem [thread:$0]  %s299_s1, 512, %s29_s20, [#allocation6], %s251_s15, %s251_s15, %s252_s16  }
  0x19   :  { %244 = dma.done.wait [#allocation3], 256  }
  0x1a   :  { %245 = vsyncadd [#allocation3], 4294967040 }
  0x1b   :  { %246 = dma.done.wait [#allocation6], 512  }
  0x1c   :  { %247 = vsyncadd [#allocation6], 4294966784  ;;  %vm56_vm0 = vcmask 261120   ;;  %v48_v0 = vld [vmem:[#allocation5 + $0x18] sm:$0xff]  ;;  %v47_v1 = vld [vmem:[#allocation5 + $0x10] sm:$0xff]  ;;  %vm138_vm1 = vcmask 785408  }
  0x1d   :  { %168 = vmatprep.subr.mxu0 %v48_v0  ;;  %v43_v2 = vld [vmem:[#allocation2] sm:$0xff]  ;;  %v46_v3 = vld [vmem:[#allocation5 + $0x8] sm:$0xff]  ;;  %v45_v4 = vld [vmem:[#allocation5] sm:$0xff]  ;;  %s254_s24 = smov [#allocation7]  }
  0x1e   :  { %169 = vmatpush3.msra.mxu0 %v48_v0  ;;  %176 = vmatprep.mubr.msk.f32.mxu0 %vm56_vm0, %v43_v2  ;;  %v44_v5 = vld [vmem:[#allocation2 + $0x8] sm:$0xff]  ;;  %v159_v6 = vld [vmem:[%s300_s2] ss:$0 sm:$0xff]  ;;  %s146_s25 = sshll.u32 %s254_s24, 4  ;;  %s147_s25 = int_to_ptr.vmem [resolvable:$true] %s146_s25 }
  0x1f   :  { %170 = vmatprep.subr.mxu0 %v47_v1  ;;  %s224_s26 = scalar_lea.vmem %s147_s25, 256  ;;  %p229_p11 = scmp.lt.s32.totalorder %s147_s25, %s147_s25 }
  0x20   :  { %171 = vmatpush3.msra.mxu0 %v47_v1  ;;  %p225_p10 = scmp.ne.s32.totalorder %s147_s25, %s224_s26  ;;  %p230_p12 = scmp.lt.s32.totalorder %s224_s26, %s224_s26 }
  0x21   :  { %172 = vmatprep.subr.mxu0 %v46_v3 }
  0x22   :  { %173 = vmatpush3.msra.mxu0 %v46_v3  ;;  %p231_p13 = por %p230_p12, %p229_p11 }
  0x23   :  { %174 = vmatprep.subr.mxu0 %v45_v4 }
  0x24   :  { %175 = vmatpush3.msra.mxu0 %v45_v4  ;;  %p232_p0 = pnand %p231_p13, %p225_p10 }
  0x25   :  { %177 = vmatmul.mubr.msk.f32.vlgmr.msra.gmra.mxu0 %vm56_vm0, %v44_v5 }
  0xe5   :  { %v178_v7 = vpop.f32.mrf.mxu0 }
  0xe6   :  { %v135_v8 = vadd.f32 %v178_v7, %v159_v6 }
  0xe7   :  { %v129_v9 = vpop.f32.mrf.mxu0 }
  0xe8   :  { %v130_v10 = vadd.f32 %v159_v6, %v129_v9  ;;  %140 = vst.msk [vmem:[#allocation7 + $0x8] sm:$0xff] %vm138_vm1, %v135_v8 }
  0xea   :  { %139 = vst.msk [vmem:[#allocation7] sm:$0xff] %vm138_vm1, %v130_v10 }
  0xeb   :  { %235 = shalt.err (!%p232_p0)
}
  0xec   :  { %152 = dma.vmem_to_hbm [thread:$0]  %s147_s25, 256, %s301_s3, [#allocation4], %s251_s15, %s251_s15, %s252_s16  }
  0xed   :  { %248 = dma.done.wait [#allocation4], 256  }
  0xee   :  { %249 = vsyncadd [#allocation4], 4294967040 }
  0xef   :  { %156 = vsyncpa [#allocation3], 1 }
  0xf0   :  { %157 = vsyncpa [#allocation6], 1 }
  0xf1   :  { %158 = vsyncpa [#allocation4], 1 }

</bundles_post_ra>
